<compile_context>
chip_gen: v5e
topology: v5e:2x2
jax: 0.10.0
libtpu: 0.0.40
codegen_flags: <defaults>
</compile_context>

<pallas_src>
import functools

import jax
import jax.numpy as jnp
from jax.experimental import pallas as pl
from jax.experimental.pallas import tpu as pltpu

CONTEXT_SIZE = 2
EMBEDDING_DIM = 10
HIDDEN = 128
FAN_IN = CONTEXT_SIZE * EMBEDDING_DIM
LANE = 128
# Largest vocab tile (f32 columns).  Double-buffered w2 tile = 2*128*8192*4 B
# = 8 MiB, which fits inside the default scoped-VMEM limit on every TPU
# generation (v5e 16 MiB, v6e/v7x 32 MiB) without raising vmem_limit_bytes,
# while letting small/medium vocabs run as a single grid step.
MAX_TILE_N = 8192
NEG_INF = -1e30


def ngram_kernel(embeds_ref,            # VMEM (1, FAN_IN)
                 w1_ref, b1_ref,        # VMEM (FAN_IN, HIDDEN), (1, HIDDEN)
                 w2_ref, b2_ref,        # VMEM (HIDDEN, TN), (1, TN)
                 logits_ref, lse_ref,   # VMEM (1, TN), (1, 1)
                 h_scr, m_scr, l_scr):  # VMEM scratch
    j = pl.program_id(0)

    # ---- first vocab tile only: first linear + relu, init softmax stats ----
    @pl.when(j == 0)
    def _():
        h = jnp.dot(embeds_ref[...], w1_ref[...],
                    preferred_element_type=jnp.float32) + b1_ref[...]
        h_scr[...] = jnp.maximum(h, 0.0)
        m_scr[...] = jnp.full_like(m_scr, NEG_INF)
        l_scr[...] = jnp.zeros_like(l_scr)

    # ---- every vocab tile: logits + online logsumexp ----
    # Padded vocab columns have w2 == 0 and b2 == -1e30, so their logits are
    # the -1e30 sentinel and contribute exp(-1e30 - m) == 0 to the running
    # sum; no in-kernel mask needed.
    logits = jnp.dot(h_scr[...], w2_ref[...],
                     preferred_element_type=jnp.float32) + b2_ref[...]
    logits_ref[...] = logits

    m_prev = m_scr[...]
    m_new = jnp.maximum(m_prev, jnp.max(logits, axis=1, keepdims=True))
    l_scr[...] = (l_scr[...] * jnp.exp(m_prev - m_new)
                  + jnp.sum(jnp.exp(logits - m_new), axis=1, keepdims=True))
    m_scr[...] = m_new

    @pl.when(j == pl.num_programs(0) - 1)
    def _():
        lse_ref[...] = m_scr[...] + jnp.log(l_scr[...])


def pad_vocab_params(w2, b2):
    """One-time parameter prep (NOT in the per-call hot path).

    Pads the vocab axis of w2 (with zeros) and b2 (with -1e30) up to a
    multiple of the chosen vocab tile width, and returns the static tile
    width.  Call once at init; pass the padded params to ngram_forward.
    """
    vocab_size = w2.shape[1]
    vocab_128 = LANE * pl.cdiv(vocab_size, LANE)
    tile_n = min(vocab_128, MAX_TILE_N)
    vocab_pad = tile_n * pl.cdiv(vocab_128, tile_n)
    pad = vocab_pad - vocab_size
    w2_p = jnp.pad(w2, ((0, 0), (0, pad)))
    b2_p = jnp.pad(b2, (0, pad), constant_values=NEG_INF).reshape(1, vocab_pad)
    return w2_p, b2_p, tile_n


@functools.partial(jax.jit, static_argnames=("vocab_size", "tile_n"))
def ngram_forward(x, emb, w1, b1, w2_p, b2_p, *, vocab_size, tile_n):
    """x: (CONTEXT_SIZE,) int token ids.  Returns (1, vocab_size) float32."""
    vocab_pad = w2_p.shape[1]
    num_tiles = vocab_pad // tile_n

    # Clamp ids: out-of-range tokens map to a valid row instead of OOB reads.
    x = jnp.clip(x.astype(jnp.int32), 0, vocab_size - 1)
    # TODO(synk): the 2-row data-dependent embedding gather stays in XLA here
    # (sub-(8,128) row fetch; moved off the kernel critical path per perf
    # review).  Everything downstream runs in the Pallas kernel.
    embeds = emb[x].reshape(1, FAN_IN)
    b1_2d = b1.reshape(1, HIDDEN)

    grid_spec = pltpu.PrefetchScalarGridSpec(
        num_scalar_prefetch=0,
        grid=(num_tiles,),
        in_specs=[
            pl.BlockSpec((1, FAN_IN), lambda j: (0, 0)),         # embeds
            pl.BlockSpec((FAN_IN, HIDDEN), lambda j: (0, 0)),    # w1
            pl.BlockSpec((1, HIDDEN), lambda j: (0, 0)),         # b1
            pl.BlockSpec((HIDDEN, tile_n), lambda j: (0, j)),    # w2 tile
            pl.BlockSpec((1, tile_n), lambda j: (0, j)),         # b2 tile
        ],
        out_specs=[
            pl.BlockSpec((1, tile_n), lambda j: (0, j)),         # raw logits
            pl.BlockSpec((1, 1), lambda j: (0, 0)),              # logsumexp
        ],
        scratch_shapes=[
            pltpu.VMEM((1, HIDDEN), jnp.float32),                # h_scr
            pltpu.VMEM((1, 1), jnp.float32),                     # m_scr
            pltpu.VMEM((1, 1), jnp.float32),                     # l_scr
        ],
    )

    logits, lse = pl.pallas_call(
        ngram_kernel,
        out_shape=(jax.ShapeDtypeStruct((1, vocab_pad), jnp.float32),
                   jax.ShapeDtypeStruct((1, 1), jnp.float32)),
        grid_spec=grid_spec,
        compiler_params=pltpu.CompilerParams(
            # The vocab-tile axis carries the online-softmax reduction state.
            dimension_semantics=("arbitrary",)),
    )(embeds, w1, b1_2d, w2_p, b2_p)

    # Cheap epilogue: normalize with the kernel-computed logsumexp and drop
    # the padded columns (which hold the -1e30 sentinel).
    return (logits - lse)[:, :vocab_size]


def reference_forward(x, emb, w1, b1, w2, b2):
    """Pure-JAX reference mirroring the PyTorch module."""
    embeds = emb[x].reshape(1, -1)                       # (1, context*emb_dim)
    h = jax.nn.relu(embeds @ w1 + b1)                    # (1, 128)
    logits = h @ w2 + b2                                 # (1, vocab)
    return jax.nn.log_softmax(logits, axis=1)


if __name__ == "__main__":
    vocab_size = 1000  # deliberately not a multiple of 128 (exercises padding)

    key = jax.random.PRNGKey(0)
    k_emb, k_w1, k_b1, k_w2, k_b2, k_x = jax.random.split(key, 6)

    emb = jax.random.normal(k_emb, (vocab_size, EMBEDDING_DIM), jnp.float32)
    lim1 = 1.0 / FAN_IN ** 0.5
    w1 = jax.random.uniform(k_w1, (FAN_IN, HIDDEN), jnp.float32, -lim1, lim1)
    b1 = jax.random.uniform(k_b1, (HIDDEN,), jnp.float32, -lim1, lim1)
    lim2 = 1.0 / HIDDEN ** 0.5
    w2 = jax.random.uniform(k_w2, (HIDDEN, vocab_size), jnp.float32,
                            -lim2, lim2)
    b2 = jax.random.uniform(k_b2, (vocab_size,), jnp.float32, -lim2, lim2)

    # One-time parameter prep (outside the per-call hot path).
    w2_p, b2_p, tile_n = pad_vocab_params(w2, b2)

    # Context indices (the module's `x`): (context_size,) ints.
    x = jax.random.randint(k_x, (CONTEXT_SIZE,), 0, vocab_size, jnp.int32)

    out = jax.block_until_ready(
        ngram_forward(x, emb, w1, b1, w2_p, b2_p,
                      vocab_size=vocab_size, tile_n=tile_n))
    ref = reference_forward(x, emb, w1, b1, w2, b2)

    assert out.shape == (1, vocab_size)
    err = float(jnp.max(jnp.abs(out - ref)))
    assert jnp.allclose(out, ref, atol=2e-5, rtol=1e-5), f"max abs err = {err}"

    print("KERNEL_OK")
</pallas_src>

<mosaic_0001>
module attributes {stable_mosaic.version = 11 : i64} {
  func.func @ngram_kernel(%arg0: i32, %arg1: memref<1x20xf32, #tpu.memory_space<vmem>>, %arg2: memref<20x128xf32, #tpu.memory_space<vmem>>, %arg3: memref<1x128xf32, #tpu.memory_space<vmem>>, %arg4: memref<128x1024xf32, #tpu.memory_space<vmem>>, %arg5: memref<1x1024xf32, #tpu.memory_space<vmem>>, %arg6: memref<1x1024xf32, #tpu.memory_space<vmem>>, %arg7: memref<1x1xf32, #tpu.memory_space<vmem>>, %arg8: memref<1x128xf32, #tpu.memory_space<vmem>>, %arg9: memref<1x1xf32, #tpu.memory_space<vmem>>, %arg10: memref<1x1xf32, #tpu.memory_space<vmem>>) attributes {dimension_semantics = [#tpu.dimension_semantics<arbitrary>], iteration_bounds = array<i64: 1>, scalar_prefetch = 0 : i64, scratch_operands = 3 : i64, tpu.core_type = #tpu.core_type<tc>, window_params = [{pipeline_mode = #tpu.pipeline_mode<synchronous>, transform_indices = @transform_0, window_bounds = array<i64: 1, 20>}, {pipeline_mode = #tpu.pipeline_mode<synchronous>, transform_indices = @transform_1, window_bounds = array<i64: 20, 128>}, {pipeline_mode = #tpu.pipeline_mode<synchronous>, transform_indices = @transform_2, window_bounds = array<i64: 1, 128>}, {transform_indices = @transform_3, window_bounds = array<i64: 128, 1024>}, {transform_indices = @transform_4, window_bounds = array<i64: 1, 1024>}, {transform_indices = @transform_5, window_bounds = array<i64: 1, 1024>}, {pipeline_mode = #tpu.pipeline_mode<synchronous>, transform_indices = @transform_6, window_bounds = array<i64: 1, 1>}]} {
    %c0_i32 = arith.constant 0 : i32
    %0 = arith.cmpi eq, %arg0, %c0_i32 : i32
    %1 = arith.extui %0 : i1 to i32
    %c0_i32_0 = arith.constant 0 : i32
    %2 = arith.cmpi ne, %1, %c0_i32_0 : i32
    scf.if %2 {
      %c0_20 = arith.constant 0 : index
      %c0_21 = arith.constant 0 : index
      %28 = vector.load %arg1[%c0_20, %c0_21] : memref<1x20xf32, #tpu.memory_space<vmem>>, vector<1x20xf32>
      %c0_22 = arith.constant 0 : index
      %c0_23 = arith.constant 0 : index
      %29 = vector.load %arg2[%c0_22, %c0_23] : memref<20x128xf32, #tpu.memory_space<vmem>>, vector<20x128xf32>
      %cst_24 = arith.constant dense<0.000000e+00> : vector<1x128xf32>
      %30 = tpu.matmul %28, %29, %cst_24 {dimension_numbers = #tpu.dot_dimension_numbers<[1], [0], [0], [1], [0, 0, 1, 1], [], []>} : vector<1x20xf32>, vector<20x128xf32>, vector<1x128xf32> -> vector<1x128xf32>
      %c0_25 = arith.constant 0 : index
      %c0_26 = arith.constant 0 : index
      %31 = vector.load %arg3[%c0_25, %c0_26] : memref<1x128xf32, #tpu.memory_space<vmem>>, vector<1x128xf32>
      %32 = arith.addf %30, %31 : vector<1x128xf32>
      %cst_27 = arith.constant 0.000000e+00 : f32
      %33 = vector.broadcast %cst_27 : f32 to vector<1x128xf32>
      %34 = arith.maximumf %32, %33 : vector<1x128xf32>
      %c0_28 = arith.constant 0 : index
      %c0_29 = arith.constant 0 : index
      %35 = vector.load %arg8[%c0_28, %c0_29] : memref<1x128xf32, #tpu.memory_space<vmem>>, vector<1x128xf32>
      tpu.vector_store %arg8[%c0_28, %c0_29], %34 {strides = array<i32>} : memref<1x128xf32, #tpu.memory_space<vmem>>, vector<1x128xf32>,
      %cst_30 = arith.constant -1.000000e+30 : f32
      %36 = vector.broadcast %cst_30 : f32 to vector<1x1xf32>
      %c0_31 = arith.constant 0 : index
      %c0_32 = arith.constant 0 : index
      %37 = vector.load %arg9[%c0_31, %c0_32] : memref<1x1xf32, #tpu.memory_space<vmem>>, vector<1x1xf32>
      tpu.vector_store %arg9[%c0_31, %c0_32], %36 {strides = array<i32>} : memref<1x1xf32, #tpu.memory_space<vmem>>, vector<1x1xf32>,
      %cst_33 = arith.constant 0.000000e+00 : f32
      %38 = vector.broadcast %cst_33 : f32 to vector<1x1xf32>
      %c0_34 = arith.constant 0 : index
      %c0_35 = arith.constant 0 : index
      %39 = vector.load %arg10[%c0_34, %c0_35] : memref<1x1xf32, #tpu.memory_space<vmem>>, vector<1x1xf32>
      tpu.vector_store %arg10[%c0_34, %c0_35], %38 {strides = array<i32>} : memref<1x1xf32, #tpu.memory_space<vmem>>, vector<1x1xf32>,
    } else {
    }
    %c0 = arith.constant 0 : index
    %c0_1 = arith.constant 0 : index
    %3 = vector.load %arg8[%c0, %c0_1] : memref<1x128xf32, #tpu.memory_space<vmem>>, vector<1x128xf32>
    %c0_2 = arith.constant 0 : index
    %c0_3 = arith.constant 0 : index
    %4 = vector.load %arg4[%c0_2, %c0_3] : memref<128x1024xf32, #tpu.memory_space<vmem>>, vector<128x1024xf32>
    %cst = arith.constant dense<0.000000e+00> : vector<1x1024xf32>
    %5 = tpu.matmul %3, %4, %cst {dimension_numbers = #tpu.dot_dimension_numbers<[1], [0], [0], [1], [0, 0, 1, 1], [], []>} : vector<1x128xf32>, vector<128x1024xf32>, vector<1x1024xf32> -> vector<1x1024xf32>
    %c0_4 = arith.constant 0 : index
    %c0_5 = arith.constant 0 : index
    %6 = vector.load %arg5[%c0_4, %c0_5] : memref<1x1024xf32, #tpu.memory_space<vmem>>, vector<1x1024xf32>
    %7 = arith.addf %5, %6 : vector<1x1024xf32>
    %c0_6 = arith.constant 0 : index
    %c0_7 = arith.constant 0 : index
    %8 = vector.load %arg6[%c0_6, %c0_7] : memref<1x1024xf32, #tpu.memory_space<vmem>>, vector<1x1024xf32>
    tpu.vector_store %arg6[%c0_6, %c0_7], %7 {strides = array<i32>} : memref<1x1024xf32, #tpu.memory_space<vmem>>, vector<1x1024xf32>,
    %c0_8 = arith.constant 0 : index
    %c0_9 = arith.constant 0 : index
    %9 = vector.load %arg9[%c0_8, %c0_9] : memref<1x1xf32, #tpu.memory_space<vmem>>, vector<1x1xf32>
    %cst_10 = arith.constant dense<0xFF800000> : vector<1xf32>
    %10 = vector.multi_reduction <maximumf>, %7, %cst_10 [1] : vector<1x1024xf32> to vector<1xf32>
    %11 = vector.shape_cast %10 : vector<1xf32> to vector<1x1xf32>
    %12 = arith.maximumf %9, %11 : vector<1x1xf32>
    %c0_11 = arith.constant 0 : index
    %c0_12 = arith.constant 0 : index
    %13 = vector.load %arg10[%c0_11, %c0_12] : memref<1x1xf32, #tpu.memory_space<vmem>>, vector<1x1xf32>
    %14 = arith.subf %9, %12 : vector<1x1xf32>
    %15 = math.exp %14 : vector<1x1xf32>
    %16 = arith.mulf %13, %15 : vector<1x1xf32>
    %17 = vector.broadcast %12 : vector<1x1xf32> to vector<1x1024xf32>
    %18 = arith.subf %7, %17 : vector<1x1024xf32>
    %19 = math.exp %18 : vector<1x1024xf32>
    %cst_13 = arith.constant dense<0.000000e+00> : vector<1xf32>
    %20 = vector.multi_reduction <add>, %19, %cst_13 [1] : vector<1x1024xf32> to vector<1xf32>
    %21 = vector.shape_cast %20 : vector<1xf32> to vector<1x1xf32>
    %22 = arith.addf %16, %21 : vector<1x1xf32>
    %c0_14 = arith.constant 0 : index
    %c0_15 = arith.constant 0 : index
    %23 = vector.load %arg10[%c0_14, %c0_15] : memref<1x1xf32, #tpu.memory_space<vmem>>, vector<1x1xf32>
    tpu.vector_store %arg10[%c0_14, %c0_15], %22 {strides = array<i32>} : memref<1x1xf32, #tpu.memory_space<vmem>>, vector<1x1xf32>,
    %c0_16 = arith.constant 0 : index
    %c0_17 = arith.constant 0 : index
    %24 = vector.load %arg9[%c0_16, %c0_17] : memref<1x1xf32, #tpu.memory_space<vmem>>, vector<1x1xf32>
    tpu.vector_store %arg9[%c0_16, %c0_17], %12 {strides = array<i32>} : memref<1x1xf32, #tpu.memory_space<vmem>>, vector<1x1xf32>,
    %c0_i32_18 = arith.constant 0 : i32
    %25 = arith.cmpi eq, %arg0, %c0_i32_18 : i32
    %26 = arith.extui %25 : i1 to i32
    %c0_i32_19 = arith.constant 0 : i32
    %27 = arith.cmpi ne, %26, %c0_i32_19 : i32
    scf.if %27 {
      %c0_20 = arith.constant 0 : index
      %c0_21 = arith.constant 0 : index
      %28 = vector.load %arg9[%c0_20, %c0_21] : memref<1x1xf32, #tpu.memory_space<vmem>>, vector<1x1xf32>
      %c0_22 = arith.constant 0 : index
      %c0_23 = arith.constant 0 : index
      %29 = vector.load %arg10[%c0_22, %c0_23] : memref<1x1xf32, #tpu.memory_space<vmem>>, vector<1x1xf32>
      %30 = math.log %29 : vector<1x1xf32>
      %31 = arith.addf %28, %30 : vector<1x1xf32>
      %c0_24 = arith.constant 0 : index
      %c0_25 = arith.constant 0 : index
      %32 = vector.load %arg7[%c0_24, %c0_25] : memref<1x1xf32, #tpu.memory_space<vmem>>, vector<1x1xf32>
      tpu.vector_store %arg7[%c0_24, %c0_25], %31 {strides = array<i32>} : memref<1x1xf32, #tpu.memory_space<vmem>>, vector<1x1xf32>,
    } else {
    }
    return
  }
  func.func @transform_0(%arg0: i32) -> (i32, i32) {
    %c0_i32 = arith.constant 0 : i32
    %c0_i32_0 = arith.constant 0 : i32
    %c0_i32_1 = arith.constant 0 : i32
    return %c0_i32, %c0_i32_0 : i32, i32
  }
  func.func @transform_1(%arg0: i32) -> (i32, i32) {
    %c0_i32 = arith.constant 0 : i32
    %c0_i32_0 = arith.constant 0 : i32
    %c0_i32_1 = arith.constant 0 : i32
    return %c0_i32, %c0_i32_0 : i32, i32
  }
  func.func @transform_2(%arg0: i32) -> (i32, i32) {
    %c0_i32 = arith.constant 0 : i32
    %c0_i32_0 = arith.constant 0 : i32
    %c0_i32_1 = arith.constant 0 : i32
    return %c0_i32, %c0_i32_0 : i32, i32
  }
  func.func @transform_3(%arg0: i32) -> (i32, i32) {
    %c0_i32 = arith.constant 0 : i32
    %c0_i32_0 = arith.constant 0 : i32
    return %c0_i32, %arg0 : i32, i32
  }
  func.func @transform_4(%arg0: i32) -> (i32, i32) {
    %c0_i32 = arith.constant 0 : i32
    %c0_i32_0 = arith.constant 0 : i32
    return %c0_i32, %arg0 : i32, i32
  }
  func.func @transform_5(%arg0: i32) -> (i32, i32) {
    %c0_i32 = arith.constant 0 : i32
    %c0_i32_0 = arith.constant 0 : i32
    return %c0_i32, %arg0 : i32, i32
  }
  func.func @transform_6(%arg0: i32) -> (i32, i32) {
    %c0_i32 = arith.constant 0 : i32
    %c0_i32_0 = arith.constant 0 : i32
    %c0_i32_1 = arith.constant 0 : i32
    return %c0_i32, %c0_i32_0 : i32, i32
  }
}

</mosaic_0001>

<bundles_post_ra>
// kernel: ngram_forward.1
= control target key start
LH: loop header
LB: loop body
LE: loop exit
PB: predicated region body
PF: predicated region fallthrough
CT: control target
= control target key end

     0   :  { %vm36_vm0 = vcmask 1043456   ;;  %vm32_vm1 = vcmask 162816   ;;  %s1066_s0 = inlined_call_operand.vmem [shape: f32[1,20], index: 0, kind: input, shape index: {}]   ;;  %s1067_s1 = inlined_call_operand.vmem [shape: f32[20,128], index: 1, kind: input, shape index: {}]   ;;  %s1068_s2 = inlined_call_operand.vmem [shape: f32[1,128], index: 2, kind: input, shape index: {}]   ;;  %s1069_s3 = inlined_call_operand.vmem [shape: f32[128,1024], index: 3, kind: input, shape index: {}]   ;;  %s1070_s4 = inlined_call_operand.vmem [shape: f32[1,1024], index: 4, kind: input, shape index: {}]   ;;  %s1071_s5 = inlined_call_operand.vmem [shape: f32[1,1024], index: 5, kind: output, shape index: {0}]   ;;  %s1072_s6 = inlined_call_operand.hbm [shape: f32[1,1], index: 6, kind: output, shape index: {1}]  }
   0x1   :  { %v30_v0 = vld [vmem:[%s1067_s1 + $0x10] sm:$0xf]  ;;  %v29_v1 = vld [vmem:[%s1067_s1 + $0x8] sm:$0xff]  ;;  %v186_v2 = vld [vmem:[%s1069_s3 + $0x3c0] sm:$0xff] }
   0x2   :  { %507 = vmatpush.msk.msra.mxu0 %vm36_vm0, %v30_v0  ;;  %v187_v3 = vld [vmem:[%s1069_s3 + $0x3c8] sm:$0xff]  ;;  %v28_v4 = vld [vmem:[%s1067_s1] sm:$0xff]  ;;  %212 = vmatpush.msra.mxu1 %v186_v2  ;;  %v188_v5 = vld [vmem:[%s1069_s3 + $0x3d0] sm:$0xff] }
   0x3   :  { %232 = vmatpush.msra.mxu2 %v187_v3  ;;  %v178_v6 = vld [vmem:[%s1069_s3 + $0x380] sm:$0xff]  ;;  %252 = vmatpush.msra.mxu3 %v188_v5  ;;  %v179_v8 = vld [vmem:[%s1069_s3 + $0x388] sm:$0xff]  ;;  %v180_v9 = vld [vmem:[%s1069_s3 + $0x390] sm:$0xff] }
   0x4   :  { %54 = vmatpush.msra.mxu0 %v29_v1  ;;  %v27_v7 = vld [vmem:[%s1066_s0] sm:$0x1]  ;;  %v189_v10 = vld [vmem:[%s1069_s3 + $0x3d8] sm:$0xff]  ;;  %213 = vmatpush.msra.mxu1 %v178_v6  ;;  %v171_v12 = vld [vmem:[%s1069_s3 + $0x348] sm:$0xff] }
   0x5   :  { %233 = vmatpush.msra.mxu2 %v179_v8  ;;  %v170_v11 = vld [vmem:[%s1069_s3 + $0x340] sm:$0xff]  ;;  %253 = vmatpush.msra.mxu3 %v180_v9  ;;  %v172_v13 = vld [vmem:[%s1069_s3 + $0x350] sm:$0xff]  ;;  %v181_v15 = vld [vmem:[%s1069_s3 + $0x398] sm:$0xff] }
   0x6   :  { %55 = vmatpush.msra.mxu0 %v28_v4  ;;  %v162_v14 = vld [vmem:[%s1069_s3 + $0x300] sm:$0xff]  ;;  %214 = vmatpush.msra.mxu1 %v170_v11  ;;  %v163_v16 = vld [vmem:[%s1069_s3 + $0x308] sm:$0xff]  ;;  %v164_v17 = vld [vmem:[%s1069_s3 + $0x310] sm:$0xff] }
   0x7   :  { %508 = vmatmul.msk.f32.vlgmr.msra.gmra.mxu0 %vm32_vm1, %v27_v7  ;;  %234 = vmatpush.msra.mxu2 %v171_v12  ;;  %v154_v18 = vld [vmem:[%s1069_s3 + $0x2c0] sm:$0xff]  ;;  %v173_v19 = vld [vmem:[%s1069_s3 + $0x358] sm:$0xff]  ;;  %v155_v20 = vld [vmem:[%s1069_s3 + $0x2c8] sm:$0xff] }
   0x8   :  { %272 = vmatpush.msrb.mxu0 %v189_v10  ;;  %254 = vmatpush.msra.mxu3 %v172_v13  ;;  %v156_v21 = vld [vmem:[%s1069_s3 + $0x2d0] sm:$0xff]  ;;  %v146_v22 = vld [vmem:[%s1069_s3 + $0x280] sm:$0xff]  ;;  %v165_v23 = vld [vmem:[%s1069_s3 + $0x318] sm:$0xff] }
   0x9   :  { %215 = vmatpush.msra.mxu1 %v162_v14  ;;  %235 = vmatpush.msra.mxu2 %v163_v16  ;;  %v147_v24 = vld [vmem:[%s1069_s3 + $0x288] sm:$0xff]  ;;  %v148_v25 = vld [vmem:[%s1069_s3 + $0x290] sm:$0xff]  ;;  %v138_v26 = vld [vmem:[%s1069_s3 + $0x240] sm:$0xff] }
   0xa   :  { %273 = vmatpush.msrb.mxu0 %v181_v15  ;;  %255 = vmatpush.msra.mxu3 %v164_v17  ;;  %v157_v27 = vld [vmem:[%s1069_s3 + $0x2d8] sm:$0xff]  ;;  %v139_v28 = vld [vmem:[%s1069_s3 + $0x248] sm:$0xff]  ;;  %v140_v29 = vld [vmem:[%s1069_s3 + $0x250] sm:$0xff] }
   0xb   :  { %216 = vmatpush.msra.mxu1 %v154_v18  ;;  %236 = vmatpush.msra.mxu2 %v155_v20  ;;  %v130_v30 = vld [vmem:[%s1069_s3 + $0x200] sm:$0xff]  ;;  %v149_v31 = vld [vmem:[%s1069_s3 + $0x298] sm:$0xff]  ;;  %v131_v32 = vld [vmem:[%s1069_s3 + $0x208] sm:$0xff] }
   0xc   :  { %274 = vmatpush.msrb.mxu0 %v173_v19  ;;  %256 = vmatpush.msra.mxu3 %v156_v21  ;;  %v132_v33 = vld [vmem:[%s1069_s3 + $0x210] sm:$0xff]  ;;  %v122_v34 = vld [vmem:[%s1069_s3 + $0x1c0] sm:$0xff]  ;;  %v141_v35 = vld [vmem:[%s1069_s3 + $0x258] sm:$0xff] }
   0xd   :  { %217 = vmatpush.msra.mxu1 %v146_v22  ;;  %237 = vmatpush.msra.mxu2 %v147_v24  ;;  %v123_v36 = vld [vmem:[%s1069_s3 + $0x1c8] sm:$0xff]  ;;  %v124_v37 = vld [vmem:[%s1069_s3 + $0x1d0] sm:$0xff]  ;;  %v114_v38 = vld [vmem:[%s1069_s3 + $0x180] sm:$0xff] }
   0xe   :  { %275 = vmatpush.msrb.mxu0 %v165_v23  ;;  %257 = vmatpush.msra.mxu3 %v148_v25  ;;  %v133_v39 = vld [vmem:[%s1069_s3 + $0x218] sm:$0xff]  ;;  %v115_v40 = vld [vmem:[%s1069_s3 + $0x188] sm:$0xff]  ;;  %v116_v41 = vld [vmem:[%s1069_s3 + $0x190] sm:$0xff] }
   0xf   :  { %218 = vmatpush.msra.mxu1 %v138_v26  ;;  %238 = vmatpush.msra.mxu2 %v139_v28  ;;  %v106_v42 = vld [vmem:[%s1069_s3 + $0x140] sm:$0xff]  ;;  %v125_v43 = vld [vmem:[%s1069_s3 + $0x1d8] sm:$0xff]  ;;  %v107_v44 = vld [vmem:[%s1069_s3 + $0x148] sm:$0xff] }
  0x10   :  { %276 = vmatpush.msrb.mxu0 %v157_v27  ;;  %258 = vmatpush.msra.mxu3 %v140_v29  ;;  %v108_v45 = vld [vmem:[%s1069_s3 + $0x150] sm:$0xff]  ;;  %v98_v46 = vld [vmem:[%s1069_s3 + $0x100] sm:$0xff]  ;;  %v117_v47 = vld [vmem:[%s1069_s3 + $0x198] sm:$0xff] }
  0x11   :  { %219 = vmatpush.msra.mxu1 %v130_v30  ;;  %239 = vmatpush.msra.mxu2 %v131_v32  ;;  %v99_v48 = vld [vmem:[%s1069_s3 + $0x108] sm:$0xff]  ;;  %v100_v49 = vld [vmem:[%s1069_s3 + $0x110] sm:$0xff]  ;;  %v90_v50 = vld [vmem:[%s1069_s3 + $0xc0] sm:$0xff] }
  0x12   :  { %277 = vmatpush.msrb.mxu0 %v149_v31  ;;  %259 = vmatpush.msra.mxu3 %v132_v33  ;;  %v109_v51 = vld [vmem:[%s1069_s3 + $0x158] sm:$0xff]  ;;  %v91_v52 = vld [vmem:[%s1069_s3 + $0xc8] sm:$0xff]  ;;  %v92_v53 = vld [vmem:[%s1069_s3 + $0xd0] sm:$0xff] }
  0x13   :  { %220 = vmatpush.msra.mxu1 %v122_v34  ;;  %240 = vmatpush.msra.mxu2 %v123_v36  ;;  %v82_v54 = vld [vmem:[%s1069_s3 + $0x80] sm:$0xff]  ;;  %v101_v55 = vld [vmem:[%s1069_s3 + $0x118] sm:$0xff]  ;;  %v83_v56 = vld [vmem:[%s1069_s3 + $0x88] sm:$0xff] }
  0x14   :  { %278 = vmatpush.msrb.mxu0 %v141_v35  ;;  %260 = vmatpush.msra.mxu3 %v124_v37  ;;  %v84_v57 = vld [vmem:[%s1069_s3 + $0x90] sm:$0xff]  ;;  %v74_v58 = vld [vmem:[%s1069_s3 + $0x40] sm:$0xff]  ;;  %v93_v59 = vld [vmem:[%s1069_s3 + $0xd8] sm:$0xff] }
  0x15   :  { %221 = vmatpush.msra.mxu1 %v114_v38  ;;  %241 = vmatpush.msra.mxu2 %v115_v40  ;;  %v75_v60 = vld [vmem:[%s1069_s3 + $0x48] sm:$0xff]  ;;  %v76_v61 = vld [vmem:[%s1069_s3 + $0x50] sm:$0xff]  ;;  %v66_v62 = vld [vmem:[%s1069_s3] sm:$0xff] }
  0x16   :  { %279 = vmatpush.msrb.mxu0 %v133_v39  ;;  %261 = vmatpush.msra.mxu3 %v116_v41 }
  0x17   :  { %222 = vmatpush.msra.mxu1 %v106_v42  ;;  %242 = vmatpush.msra.mxu2 %v107_v44 }
  0x18   :  { %280 = vmatpush.msrb.mxu0 %v125_v43  ;;  %262 = vmatpush.msra.mxu3 %v108_v45 }
  0x19   :  { %223 = vmatpush.msra.mxu1 %v98_v46  ;;  %243 = vmatpush.msra.mxu2 %v99_v48 }
  0x1a   :  { %281 = vmatpush.msrb.mxu0 %v117_v47  ;;  %263 = vmatpush.msra.mxu3 %v100_v49 }
  0x1b   :  { %224 = vmatpush.msra.mxu1 %v90_v50  ;;  %244 = vmatpush.msra.mxu2 %v91_v52 }
  0x1c   :  { %282 = vmatpush.msrb.mxu0 %v109_v51  ;;  %264 = vmatpush.msra.mxu3 %v92_v53 }
  0x1d   :  { %225 = vmatpush.msra.mxu1 %v82_v54  ;;  %245 = vmatpush.msra.mxu2 %v83_v56 }
  0x1e   :  { %283 = vmatpush.msrb.mxu0 %v101_v55 }
  0x1f   :  { %12 = vsyncpa [#allocation6], 0  ;;  %265 = vmatpush.msra.mxu3 %v84_v57  ;;  %v85_v63 = vld [vmem:[%s1069_s3 + $0x98] sm:$0xff]  ;;  %226 = vmatpush.msra.mxu1 %v74_v58  ;;  %v67_v0 = vld [vmem:[%s1069_s3 + $0x8] sm:$0xff]  ;;  %vm62_vm2 = vcmask 0   ;;  %vm387_vm3 = vcmask 1040384  }
  0x20   :  { %284 = vmatpush.msrb.mxu0 %v93_v59  ;;  %246 = vmatpush.msra.mxu2 %v75_v60  ;;  %v68_v1 = vld [vmem:[%s1069_s3 + $0x10] sm:$0xff]  ;;  %v190_v2 = vld [vmem:[%s1069_s3 + $0x3e0] sm:$0xff]  ;;  %v77_v3 = vld [vmem:[%s1069_s3 + $0x58] sm:$0xff]  ;;  %vm389_vm4 = vcmask 1042434   ;;  %vm391_vm5 = vcmask 1041408   ;;  %vm393_vm6 = vcmask 1044484  }
  0x21   :  { %266 = vmatpush.msra.mxu3 %v76_v61  ;;  %227 = vmatpush.msra.mxu1 %v66_v62  ;;  %v191_v4 = vld [vmem:[%s1069_s3 + $0x3e8] sm:$0xff]  ;;  %v192_v5 = vld [vmem:[%s1069_s3 + $0x3f0] sm:$0xff]  ;;  %v182_v6 = vld [vmem:[%s1069_s3 + $0x3a0] sm:$0xff]  ;;  %vm395_vm7 = vcmask 1046534   ;;  %vm397_vm8 = vcmask 1045508   ;;  %s496_s7 = sshll.u32 %s1072_s6, 4  ;;  %s497_s7 = int_to_ptr.hbm [resolvable:$true] %s496_s7 }
  0x22   :  { %285 = vmatpush.msrb.mxu0 %v85_v63  ;;  %247 = vmatpush.msra.mxu2 %v67_v0  ;;  %v69_v7 = vld [vmem:[%s1069_s3 + $0x18] sm:$0xff]  ;;  %v183_v8 = vld [vmem:[%s1069_s3 + $0x3a8] sm:$0xff]  ;;  %v184_v10 = vld [vmem:[%s1069_s3 + $0x3b0] sm:$0xff] }
  0x23   :  { %267 = vmatpush.msra.mxu3 %v68_v1  ;;  %292 = vmatpush.msrb.mxu1 %v190_v2  ;;  %v193_v9 = vld [vmem:[%s1069_s3 + $0x3f8] sm:$0xff]  ;;  %v174_v11 = vld [vmem:[%s1069_s3 + $0x360] sm:$0xff]  ;;  %v175_v12 = vld [vmem:[%s1069_s3 + $0x368] sm:$0xff] }
  0x24   :  { %286 = vmatpush.msrb.mxu0 %v77_v3  ;;  %312 = vmatpush.msrb.mxu2 %v191_v4  ;;  %v185_v13 = vld [vmem:[%s1069_s3 + $0x3b8] sm:$0xff]  ;;  %v176_v14 = vld [vmem:[%s1069_s3 + $0x370] sm:$0xff]  ;;  %v166_v15 = vld [vmem:[%s1069_s3 + $0x320] sm:$0xff] }
  0x25   :  { %332 = vmatpush.msrb.mxu3 %v192_v5  ;;  %293 = vmatpush.msrb.mxu1 %v182_v6  ;;  %v167_v16 = vld [vmem:[%s1069_s3 + $0x328] sm:$0xff]  ;;  %v177_v17 = vld [vmem:[%s1069_s3 + $0x378] sm:$0xff]  ;;  %v168_v18 = vld [vmem:[%s1069_s3 + $0x330] sm:$0xff] }
  0x26   :  { %287 = vmatpush.msrb.mxu0 %v69_v7  ;;  %313 = vmatpush.msrb.mxu2 %v183_v8  ;;  %v158_v19 = vld [vmem:[%s1069_s3 + $0x2e0] sm:$0xff]  ;;  %v159_v20 = vld [vmem:[%s1069_s3 + $0x2e8] sm:$0xff]  ;;  %v169_v21 = vld [vmem:[%s1069_s3 + $0x338] sm:$0xff] }
  0x27   :  { %333 = vmatpush.msrb.mxu3 %v184_v10  ;;  %294 = vmatpush.msrb.mxu1 %v174_v11  ;;  %v160_v22 = vld [vmem:[%s1069_s3 + $0x2f0] sm:$0xff]  ;;  %v161_v23 = vld [vmem:[%s1069_s3 + $0x2f8] sm:$0xff]  ;;  %v150_v24 = vld [vmem:[%s1069_s3 + $0x2a0] sm:$0xff] }
  0x28   :  { %352 = vmatpush.msra.mxu0 %v193_v9  ;;  %314 = vmatpush.msrb.mxu2 %v175_v12  ;;  %v151_v25 = vld [vmem:[%s1069_s3 + $0x2a8] sm:$0xff]  ;;  %v152_v26 = vld [vmem:[%s1069_s3 + $0x2b0] sm:$0xff]  ;;  %v153_v27 = vld [vmem:[%s1069_s3 + $0x2b8] sm:$0xff]  ;;  %v560_v9 = vmov -1e+30  }
  0x29   :  { %334 = vmatpush.msrb.mxu3 %v176_v14  ;;  %295 = vmatpush.msrb.mxu1 %v166_v15  ;;  %v142_v28 = vld [vmem:[%s1069_s3 + $0x260] sm:$0xff]  ;;  %v143_v29 = vld [vmem:[%s1069_s3 + $0x268] sm:$0xff]  ;;  %v144_v30 = vld [vmem:[%s1069_s3 + $0x270] sm:$0xff]  ;;  %63 = vst.msk [vmem:[#allocation3] sm:$0x1] %vm62_vm2, %v560_v9 }
  0x2a   :  { %353 = vmatpush.msra.mxu0 %v185_v13  ;;  %315 = vmatpush.msrb.mxu2 %v167_v16  ;;  %v145_v31 = vld [vmem:[%s1069_s3 + $0x278] sm:$0xff]  ;;  %v134_v32 = vld [vmem:[%s1069_s3 + $0x220] sm:$0xff]  ;;  %v135_v33 = vld [vmem:[%s1069_s3 + $0x228] sm:$0xff] }
  0x2b   :  { %335 = vmatpush.msrb.mxu3 %v168_v18  ;;  %296 = vmatpush.msrb.mxu1 %v158_v19  ;;  %v136_v34 = vld [vmem:[%s1069_s3 + $0x230] sm:$0xff]  ;;  %v137_v35 = vld [vmem:[%s1069_s3 + $0x238] sm:$0xff]  ;;  %v126_v36 = vld [vmem:[%s1069_s3 + $0x1e0] sm:$0xff] }
  0x2c   :  { %354 = vmatpush.msra.mxu0 %v177_v17  ;;  %316 = vmatpush.msrb.mxu2 %v159_v20  ;;  %v127_v37 = vld [vmem:[%s1069_s3 + $0x1e8] sm:$0xff]  ;;  %v128_v38 = vld [vmem:[%s1069_s3 + $0x1f0] sm:$0xff]  ;;  %v129_v39 = vld [vmem:[%s1069_s3 + $0x1f8] sm:$0xff] }
  0x2d   :  { %336 = vmatpush.msrb.mxu3 %v160_v22  ;;  %297 = vmatpush.msrb.mxu1 %v150_v24  ;;  %v118_v40 = vld [vmem:[%s1069_s3 + $0x1a0] sm:$0xff]  ;;  %v119_v41 = vld [vmem:[%s1069_s3 + $0x1a8] sm:$0xff]  ;;  %v120_v42 = vld [vmem:[%s1069_s3 + $0x1b0] sm:$0xff] }
  0x2e   :  { %355 = vmatpush.msra.mxu0 %v169_v21  ;;  %317 = vmatpush.msrb.mxu2 %v151_v25  ;;  %v121_v43 = vld [vmem:[%s1069_s3 + $0x1b8] sm:$0xff]  ;;  %v110_v44 = vld [vmem:[%s1069_s3 + $0x160] sm:$0xff]  ;;  %v111_v45 = vld [vmem:[%s1069_s3 + $0x168] sm:$0xff] }
  0x2f   :  { %337 = vmatpush.msrb.mxu3 %v152_v26  ;;  %298 = vmatpush.msrb.mxu1 %v142_v28  ;;  %v112_v46 = vld [vmem:[%s1069_s3 + $0x170] sm:$0xff]  ;;  %v113_v47 = vld [vmem:[%s1069_s3 + $0x178] sm:$0xff]  ;;  %v102_v48 = vld [vmem:[%s1069_s3 + $0x120] sm:$0xff] }
  0x30   :  { %356 = vmatpush.msra.mxu0 %v161_v23  ;;  %318 = vmatpush.msrb.mxu2 %v143_v29  ;;  %v103_v49 = vld [vmem:[%s1069_s3 + $0x128] sm:$0xff]  ;;  %v104_v50 = vld [vmem:[%s1069_s3 + $0x130] sm:$0xff]  ;;  %v105_v51 = vld [vmem:[%s1069_s3 + $0x138] sm:$0xff] }
  0x31   :  { %338 = vmatpush.msrb.mxu3 %v144_v30  ;;  %299 = vmatpush.msrb.mxu1 %v134_v32  ;;  %v94_v52 = vld [vmem:[%s1069_s3 + $0xe0] sm:$0xff]  ;;  %v95_v53 = vld [vmem:[%s1069_s3 + $0xe8] sm:$0xff]  ;;  %v96_v54 = vld [vmem:[%s1069_s3 + $0xf0] sm:$0xff] }
  0x32   :  { %357 = vmatpush.msra.mxu0 %v153_v27  ;;  %319 = vmatpush.msrb.mxu2 %v135_v33  ;;  %v97_v55 = vld [vmem:[%s1069_s3 + $0xf8] sm:$0xff]  ;;  %v86_v56 = vld [vmem:[%s1069_s3 + $0xa0] sm:$0xff]  ;;  %v87_v57 = vld [vmem:[%s1069_s3 + $0xa8] sm:$0xff] }
  0x33   :  { %339 = vmatpush.msrb.mxu3 %v136_v34  ;;  %300 = vmatpush.msrb.mxu1 %v126_v36  ;;  %v88_v58 = vld [vmem:[%s1069_s3 + $0xb0] sm:$0xff]  ;;  %v89_v59 = vld [vmem:[%s1069_s3 + $0xb8] sm:$0xff]  ;;  %v78_v60 = vld [vmem:[%s1069_s3 + $0x60] sm:$0xff] }
  0x34   :  { %358 = vmatpush.msra.mxu0 %v145_v31  ;;  %320 = vmatpush.msrb.mxu2 %v127_v37  ;;  %v79_v61 = vld [vmem:[%s1069_s3 + $0x68] sm:$0xff]  ;;  %v80_v62 = vld [vmem:[%s1069_s3 + $0x70] sm:$0xff]  ;;  %v81_v63 = vld [vmem:[%s1069_s3 + $0x78] sm:$0xff] }
  0x35   :  { %340 = vmatpush.msrb.mxu3 %v128_v38  ;;  %301 = vmatpush.msrb.mxu1 %v118_v40  ;;  %v70_v0 = vld [vmem:[%s1069_s3 + $0x20] sm:$0xff]  ;;  %v71_v1 = vld [vmem:[%s1069_s3 + $0x28] sm:$0xff]  ;;  %v72_v2 = vld [vmem:[%s1069_s3 + $0x30] sm:$0xff] }
  0x36   :  { %359 = vmatpush.msra.mxu0 %v137_v35  ;;  %321 = vmatpush.msrb.mxu2 %v119_v41  ;;  %v73_v3 = vld [vmem:[%s1069_s3 + $0x38] sm:$0xff]  ;;  %v31_v4 = vld [vmem:[%s1068_s2] sm:$0x1] }
  0x37   :  { %341 = vmatpush.msrb.mxu3 %v120_v42  ;;  %302 = vmatpush.msrb.mxu1 %v110_v44  ;;  %v194_v12 = vld [vmem:[%s1070_s4] sm:$0xff] }
  0x38   :  { %360 = vmatpush.msra.mxu0 %v129_v39  ;;  %322 = vmatpush.msrb.mxu2 %v111_v45  ;;  %v197_v13 = vperm.slane %v194_v12, 1  ;;  %v198_v14 = vperm.slane %v194_v12, 2  ;;  %v196_v15 = vperm.slane %v194_v12, 0  ;;  %v199_v16 = vperm.slane %v194_v12, 3 }
  0x39   :  { %342 = vmatpush.msrb.mxu3 %v112_v46  ;;  %303 = vmatpush.msrb.mxu1 %v102_v48  ;;  %v200_v19 = vperm.slane %v194_v12, 4  ;;  %v203_v22 = vperm.slane %v194_v12, 7  ;;  %v201_v28 = vperm.slane %v194_v12, 5  ;;  %v202_v31 = vperm.slane %v194_v12, 6 }
  0x3a   :  { %361 = vmatpush.msra.mxu0 %v121_v43  ;;  %323 = vmatpush.msrb.mxu2 %v103_v49 }
  0x3b   :  { %343 = vmatpush.msrb.mxu3 %v104_v50  ;;  %304 = vmatpush.msrb.mxu1 %v94_v52 }
  0x3c   :  { %362 = vmatpush.msra.mxu0 %v113_v47  ;;  %324 = vmatpush.msrb.mxu2 %v95_v53 }
  0x3d   :  { %344 = vmatpush.msrb.mxu3 %v96_v54  ;;  %305 = vmatpush.msrb.mxu1 %v86_v56 }
  0x3e   :  { %363 = vmatpush.msra.mxu0 %v105_v51  ;;  %325 = vmatpush.msrb.mxu2 %v87_v57 }
  0x3f   :  { %345 = vmatpush.msrb.mxu3 %v88_v58  ;;  %306 = vmatpush.msrb.mxu1 %v78_v60 }
  0x40   :  { %364 = vmatpush.msra.mxu0 %v97_v55  ;;  %326 = vmatpush.msrb.mxu2 %v79_v61 }
  0x41   :  { %346 = vmatpush.msrb.mxu3 %v80_v62  ;;  %307 = vmatpush.msrb.mxu1 %v70_v0  ;;  %v561_v0 = vmov 0  }
  0x42   :  { %365 = vmatpush.msra.mxu0 %v89_v59  ;;  %327 = vmatpush.msrb.mxu2 %v71_v1  ;;  %v562_v1 = vmov 0.0  }
  0x43   :  { %347 = vmatpush.msrb.mxu3 %v72_v2  ;;  %513 = vset.pattern.permute.xlu0 %v561_v0  ;;  %64 = vst.msk [vmem:[#allocation4] sm:$0x1] %vm62_vm2, %v562_v1  ;;  %v403_v2 = vld [vmem:[#allocation3] sm:$0x1] }
  0x44   :  { %366 = vmatpush.msra.mxu0 %v81_v63 }
  0x46   :  { %367 = vmatpush.msra.mxu0 %v73_v3 }
  0x84   :  { %v57_v5 = vpop.f32.mrf.mxu0 }
  0x85   :  { %v58_v6 = vadd.f32 %v57_v5, %v31_v4 }
  0x87   :  { %v60_v7 = vmax.f32 %v58_v6, 0.0 }
  0x89   :  { %61 = vst [vmem:[#allocation2] sm:$0x1] %v60_v7 }
  0x90   :  { %v65_v8 = vld [vmem:[#allocation2] sm:$0x1] }
  0x91   :  { %228 = vmatmul.f32.vlgmr.msra.gmra.mxu1 %v65_v8  ;;  %248 = vmatmul.f32.vlgmr.msra.gmra.mxu2 %v65_v8 }
  0x92   :  { %268 = vmatmul.f32.vlgmr.msra.gmra.mxu3 %v65_v8  ;;  %288 = vmatmul.f32.vlgmr.msrb.gmra.mxu0 %v65_v8 }
  0x99   :  { %308 = vmatmul.f32.vlgmr.msrb.gmra.mxu1 %v65_v8  ;;  %328 = vmatmul.f32.vlgmr.msrb.gmra.mxu2 %v65_v8 }
  0x9a   :  { %348 = vmatmul.f32.vlgmr.msrb.gmra.mxu3 %v65_v8  ;;  %368 = vmatmul.f32.vlgmr.msra.gmra.mxu0 %v65_v8 }
 0x10e   :  { %v229_v10 = vpop.f32.mrf.mxu1 }
 0x10f   :  { %v289_v11 = vpop.f32.mrf.mxu0  ;;  %v1007_v25 = vadd.f32 %v229_v10, %v196_v15 }
 0x110   :  { %v1009_v26 = vadd.f32 %v289_v11, %v199_v16 }
 0x111   :  { %v404_v35 = vsel %vm387_vm3, %v1007_v25, -inf }
 0x112   :  { %v382_v33 = vrot.slane %v1009_v26, 5  ;;  %v407_v36 = vsel %vm387_vm3, %v1009_v26, -inf }
 0x114   :  { %v249_v17 = vpop.f32.mrf.mxu2 }
 0x115   :  { %v269_v18 = vpop.f32.mrf.mxu3  ;;  %v1003_v20 = vadd.f32 %v249_v17, %v197_v13 }
 0x116   :  { %v309_v21 = vpop.f32.mrf.mxu1  ;;  %v1005_v23 = vadd.f32 %v269_v18, %v198_v14 }
 0x117   :  { %v369_v24 = vpop.f32.mrf.mxu0  ;;  %v1011_v27 = vadd.f32 %v309_v21, %v200_v19  ;;  %v380_v29 = vrot.slane %v1003_v20, 7  ;;  %v405_v39 = vsel %vm387_vm3, %v1003_v20, -inf }
 0x118   :  { %v1014_v30 = vadd.f32 %v369_v24, %v203_v22  ;;  %v381_v32 = vrot.slane %v1005_v23, 6  ;;  %v406_v40 = vsel %vm387_vm3, %v1005_v23, -inf }
 0x119   :  { %v408_v41 = vsel %vm387_vm3, %v1011_v27, -inf  ;;  %v388_v42 = vsel %vm387_vm3, %v1007_v25, %v380_v29  ;;  %v383_v43 = vrot.slane %v1011_v27, 4 }
 0x11a   :  { %v414_v45 = vsel %vm387_vm3, %v1014_v30, -inf  ;;  %v390_v46 = vsel %vm389_vm4, %v381_v32, %v382_v33  ;;  %v386_v47 = vrot.slane %v1014_v30, 1  ;;  %v409_v51 = vmax.f32 %v404_v35, %v408_v41 }
 0x11b   :  { %v415_v56 = vmax.f32 %v407_v36, %v414_v45  ;;  %v392_v59 = vsel %vm391_vm5, %v388_v42, %v390_v46 }
 0x11c   :  { %v329_v34 = vpop.f32.mrf.mxu2 }
 0x11d   :  { %v330_v37 = vadd.f32 %v329_v34, %v201_v28  ;;  %v349_v38 = vpop.f32.mrf.mxu3 }
 0x11e   :  { %v350_v44 = vadd.f32 %v349_v38, %v202_v31 }
 0x11f   :  { %v384_v48 = vrot.slane %v330_v37, 3  ;;  %v410_v49 = vsel %vm387_vm3, %v330_v37, -inf }
 0x120   :  { %v385_v50 = vrot.slane %v350_v44, 2  ;;  %v411_v52 = vmax.f32 %v405_v39, %v410_v49  ;;  %v412_v53 = vsel %vm387_vm3, %v350_v44, -inf  ;;  %v422_v49 = vld [vmem:[#allocation4] sm:$0x1] }
 0x121   :  { %v394_v54 = vsel %vm393_vm6, %v383_v43, %v384_v48  ;;  %v413_v55 = vmax.f32 %v406_v40, %v412_v53 }
 0x122   :  { %v396_v57 = vsel %vm395_vm7, %v385_v50, %v386_v47  ;;  %v416_v58 = vmax.f32 %v409_v51, %v411_v52 }
 0x123   :  { %v398_v60 = vsel %vm397_vm8, %v394_v54, %v396_v57  ;;  %v417_v61 = vmax.f32 %v413_v55, %v415_v56 }
 0x124   :  { %v400_v62 = vsel %vm36_vm0, %v392_v59, %v398_v60 }
 0x125   :  { %402 = vst [vmem:[%s1071_s5] sm:$0xff] %v400_v62  ;;  %v418_v63 = vmax.f32 %v416_v58, %v417_v61  ;;  %s563_s5 = smov [#allocation5]  }
 0x126   :  { %s494_s28 = sshll.u32 %s563_s5, 4  ;;  %s495_s28 = int_to_ptr.vmem [resolvable:$true] %s494_s28 }
 0x127   :  { %419 = vmax.xlane.f32.xlu0 %v418_v63 }
 0x19a   :  { %v420_v3 = vpop.xlane.xlu0 %419 }
 0x19b   :  { %v421_v4 = vmax.f32 %v403_v2, %v420_v3 }
 0x19d   :  { %v423_v5 = vsub.f32 %v403_v2, %v421_v4  ;;  %477 = vst.msk [vmem:[#allocation3] sm:$0x1] %vm62_vm2, %v421_v4  ;;  %429 = vperm.xlu0 %513, %v421_v4  }
 0x19f   :  { %v424_v47 = vmul.f32 1.442695, %v423_v5 }
 0x1a4   :  { %v481_v56 = vld [vmem:[#allocation3] sm:$0x1] }
 0x20f   :  { %v430_v6 = vpop.permute.xlu0 %429 }
 0x210   :  { %v432_v7 = vperm.slane %v430_v6, 0 }
 0x212   :  { %v433_v8 = vsub.f32 %v1007_v25, %v432_v7  ;;  %v434_v9 = vsub.f32 %v1003_v20, %v432_v7  ;;  %v435_v10 = vsub.f32 %v1005_v23, %v432_v7  ;;  %v436_v11 = vsub.f32 %v1009_v26, %v432_v7 }
 0x213   :  { %v437_v12 = vsub.f32 %v1011_v27, %v432_v7  ;;  %v438_v16 = vsub.f32 %v330_v37, %v432_v7  ;;  %v439_v18 = vsub.f32 %v350_v44, %v432_v7  ;;  %v440_v21 = vsub.f32 %v1014_v30, %v432_v7 }
 0x214   :  { %v441_v13 = vmul.f32 1.442695, %v433_v8  ;;  %v443_v14 = vmul.f32 1.442695, %v434_v9  ;;  %v445_v15 = vmul.f32 1.442695, %v435_v10 }
 0x215   :  { %v447_v17 = vmul.f32 1.442695, %v436_v11  ;;  %v449_v19 = vmul.f32 1.442695, %v437_v12  ;;  %v451_v20 = vmul.f32 1.442695, %v438_v16 }
 0x216   :  { %514 = vpow2.f32 %v441_v13  ;;  %v453_v22 = vmul.f32 1.442695, %v439_v18  ;;  %v455_v25 = vmul.f32 1.442695, %v440_v21 }
 0x217   :  { %516 = vpow2.f32 %v443_v14 }
 0x218   :  { %518 = vpow2.f32 %v445_v15 }
 0x219   :  { %520 = vpow2.f32 %v447_v17 }
 0x21a   :  { %522 = vpow2.f32 %v449_v19 }
 0x21b   :  { %524 = vpow2.f32 %v451_v20 }
 0x21c   :  { %v515_v23 = vpop.eup %514  ;;  %526 = vpow2.f32 %v453_v22 }
 0x21d   :  { %v517_v24 = vpop.eup %516  ;;  %v457_v26 = vsel %vm387_vm3, %v515_v23, 0.0  ;;  %528 = vpow2.f32 %v455_v25 }
 0x21e   :  { %v519_v27 = vpop.eup %518  ;;  %v458_v28 = vsel %vm387_vm3, %v517_v24, 0.0  ;;  %530 = vpow2.f32 %v424_v47 }
 0x21f   :  { %v521_v29 = vpop.eup %520  ;;  %v459_v31 = vadd.f32 %v458_v28, %v457_v26  ;;  %v460_v32 = vsel %vm387_vm3, %v519_v27, 0.0 }
 0x220   :  { %v523_v33 = vpop.eup %522  ;;  %v462_v34 = vsel %vm387_vm3, %v521_v29, 0.0 }
 0x221   :  { %v461_v30 = vadd.f32 %v460_v32, %v459_v31  ;;  %v525_v35 = vpop.eup %524  ;;  %v464_v37 = vsel %vm387_vm3, %v523_v33, 0.0 }
 0x222   :  { %v527_v38 = vpop.eup %526  ;;  %v466_v40 = vsel %vm387_vm3, %v525_v35, 0.0 }
 0x223   :  { %v463_v36 = vadd.f32 %v462_v34, %v461_v30  ;;  %v529_v41 = vpop.eup %528  ;;  %v468_v43 = vsel %vm387_vm3, %v527_v38, 0.0 }
 0x224   :  { %v470_v45 = vsel %vm387_vm3, %v529_v41, 0.0  ;;  %v531_v48 = vpop.eup %530 }
 0x225   :  { %v465_v39 = vadd.f32 %v464_v37, %v463_v36  ;;  %v426_v50 = vmul.f32 %v531_v48, %v422_v49 }
 0x227   :  { %v467_v42 = vadd.f32 %v466_v40, %v465_v39 }
 0x229   :  { %v469_v44 = vadd.f32 %v468_v43, %v467_v42 }
 0x22b   :  { %v471_v46 = vadd.f32 %v470_v45, %v469_v44 }
 0x22d   :  { %472 = vadd.xlane.f32.xlu1 %v471_v46 }
 0x2a0   :  { %v473_v51 = vpop.xlane.xlu1 %472 }
 0x2a1   :  { %v474_v52 = vadd.f32 %v473_v51, %v426_v50 }
 0x2a3   :  { %476 = vst.msk [vmem:[#allocation4] sm:$0x1] %vm62_vm2, %v474_v52 }
 0x2aa   :  { %v482_v53 = vld [vmem:[#allocation4] sm:$0x1] }
 0x2ab   :  { %532 = vlog2.f32 %v482_v53 }
 0x2b1   :  { %v533_v54 = vpop.eup %532 }
 0x2b2   :  { %v484_v55 = vmul.f32 0.6931472, %v533_v54 }
 0x2b4   :  { %v485_v57 = vadd.f32 %v484_v55, %v481_v56 }
 0x2b6   :  { %486 = vst.msk [vmem:[#allocation5] sm:$0x1] %vm62_vm2, %v485_v57 }
 0x2b7   :  { %499 = dma.vmem_to_hbm [thread:$0]  %s495_s28, 16, %s497_s7, [#allocation6]  }
 0x2b8   :  { %558 = dma.done.wait [#allocation6], 16  }
 0x2b9   :  { %559 = vsyncadd [#allocation6], 4294967280 }
 0x2ba   :  { %506 = vsyncpa [#allocation6], 1 }

</bundles_post_ra>
